<compile_context>
chip_gen: v6e
topology: v6e:2x2x1
jax: 0.10.0
libtpu: 0.0.40
codegen_flags: <defaults>
</compile_context>

<pallas_src>
import functools

import jax
import jax.numpy as jnp
from jax.experimental import pallas as pl
from jax.experimental.pallas import tpu as pltpu


def _bbox_head_kernel(x_ref, w_ref, b_ref, o_ref):
    # x_ref: (C_in, TH)   one batch element, one lane-dense tile of H*W columns
    # w_ref: (C_out, C_in)
    # b_ref: (C_out, 1)
    # o_ref: (C_out, TH)  lane-dense store
    acc = jnp.dot(w_ref[...], x_ref[...], preferred_element_type=jnp.float32)
    o_ref[...] = (acc + b_ref[...]).astype(o_ref.dtype)


def _round_up(x, m):
    return ((x + m - 1) // m) * m


@functools.partial(jax.jit, static_argnames=("num_anchors", "block_hw"))
def bbox_head_forward(x_nchw, weight, bias, *, num_anchors=3, block_hw=4096):
    """Forward pass of BboxHead.

    x_nchw : (N, C_in, H, W)      float32
    weight : (C_out, C_in, 1, 1)  float32 (PyTorch conv weight layout)
    bias   : (C_out,)             float32
    returns: (N, H*W*num_anchors, 4) float32
    """
    n, c_in, h, w = x_nchw.shape
    c_out = weight.shape[0]
    assert c_out == num_anchors * 4, (
        f"conv out-channels ({c_out}) must equal num_anchors*4 ({num_anchors * 4})")

    hw = h * w
    itemsize = jnp.dtype(x_nchw.dtype).itemsize

    # Free row-major reshapes only (no data movement).
    x_flat = x_nchw.reshape(n, c_in, hw)          # (N, C_in, HW), HW lane-dense
    w_mat = weight.reshape(c_out, c_in)           # 1x1 conv == per-pixel matmul
    b_col = bias.reshape(c_out, 1)

    # Lane-dense HW tile: multiple of 128, capped so small inputs get 1 block.
    th = min(block_hw, _round_up(hw, 128))
    grid = (n, pl.cdiv(hw, th))

    out_flat = pl.pallas_call(
        _bbox_head_kernel,
        out_shape=jax.ShapeDtypeStruct((n, c_out, hw), x_nchw.dtype),
        grid_spec=pltpu.PrefetchScalarGridSpec(
            num_scalar_prefetch=0,
            grid=grid,
            in_specs=[
                # batch dim squeezed; kernel sees (C_in, TH)
                pl.BlockSpec((None, c_in, th), lambda b, t: (b, 0, t)),
                # weight & bias stay resident in VMEM (constant index_map)
                pl.BlockSpec((c_out, c_in), lambda b, t: (0, 0)),
                pl.BlockSpec((c_out, 1), lambda b, t: (0, 0)),
            ],
            out_specs=pl.BlockSpec((None, c_out, th), lambda b, t: (b, 0, t)),
        ),
        compiler_params=pltpu.CompilerParams(
            dimension_semantics=("parallel", "parallel"),
        ),
        cost_estimate=pl.CostEstimate(
            flops=2 * n * hw * c_in * c_out,
            transcendentals=0,
            bytes_accessed=(x_flat.size + n * c_out * hw
                            + w_mat.size + bias.size) * itemsize,
        ),
    )(x_flat, w_mat, b_col)

    # Channels-last permute of the small 12-channel result, then a free view.
    out = jnp.transpose(out_flat, (0, 2, 1))      # (N, HW, C_out)
    return out.reshape(n, hw * num_anchors, 4)


def _reference_forward(x_nchw, weight, bias, num_anchors):
    """Pure-JAX reference matching the PyTorch semantics."""
    n, c_in, h, w = x_nchw.shape
    c_out = weight.shape[0]
    w_mat = weight.reshape(c_out, c_in)  # 1x1 conv
    out = jnp.einsum("nchw,oc->nohw", x_nchw, w_mat) + bias[None, :, None, None]
    out = jnp.transpose(out, (0, 2, 3, 1))  # NCHW -> NHWC
    return out.reshape(n, h * w * num_anchors, 4)


if __name__ == "__main__":
    # Small shapes consistent with the module: inchannels=32, num_anchors=3.
    N, C_IN, H, W = 2, 32, 16, 16
    NUM_ANCHORS = 3
    C_OUT = NUM_ANCHORS * 4

    key = jax.random.PRNGKey(0)
    kx, kw, kb = jax.random.split(key, 3)
    x = jax.random.normal(kx, (N, C_IN, H, W), dtype=jnp.float32)
    weight = jax.random.normal(kw, (C_OUT, C_IN, 1, 1), dtype=jnp.float32) * 0.05
    bias = jax.random.normal(kb, (C_OUT,), dtype=jnp.float32) * 0.05

    out = bbox_head_forward(x, weight, bias, num_anchors=NUM_ANCHORS)
    out = jax.block_until_ready(out)

    ref = _reference_forward(x, weight, bias, NUM_ANCHORS)
    assert out.shape == (N, H * W * NUM_ANCHORS, 4), out.shape
    assert jnp.allclose(out, ref, atol=1e-4, rtol=1e-4), "mismatch vs reference"

    print("KERNEL_OK")
</pallas_src>

<mosaic_0001>
module attributes {stable_mosaic.version = 11 : i64} {
  func.func @_bbox_head_kernel(%arg0: i32, %arg1: i32, %arg2: memref<1x32x256xf32, #tpu.memory_space<vmem>>, %arg3: memref<12x32xf32, #tpu.memory_space<vmem>>, %arg4: memref<12x1xf32, #tpu.memory_space<vmem>>, %arg5: memref<1x12x256xf32, #tpu.memory_space<vmem>>) attributes {dimension_semantics = [#tpu.dimension_semantics<parallel>, #tpu.dimension_semantics<parallel>], iteration_bounds = array<i64: 2, 1>, scalar_prefetch = 0 : i64, scratch_operands = 0 : i64, tpu.core_type = #tpu.core_type<tc>, window_params = [{transform_indices = @transform_0, window_bounds = array<i64: 1, 32, 256>}, {pipeline_mode = #tpu.pipeline_mode<synchronous>, transform_indices = @transform_1, window_bounds = array<i64: 12, 32>}, {pipeline_mode = #tpu.pipeline_mode<synchronous>, transform_indices = @transform_2, window_bounds = array<i64: 12, 1>}, {transform_indices = @transform_3, window_bounds = array<i64: 1, 12, 256>}]} {
    %c0 = arith.constant 0 : index
    %c0_0 = arith.constant 0 : index
    %0 = vector.load %arg3[%c0, %c0_0] : memref<12x32xf32, #tpu.memory_space<vmem>>, vector<12x32xf32>
    %c0_1 = arith.constant 0 : index
    %c0_2 = arith.constant 0 : index
    %c0_3 = arith.constant 0 : index
    %1 = vector.load %arg2[%c0_1, %c0_2, %c0_3] : memref<1x32x256xf32, #tpu.memory_space<vmem>>, vector<1x32x256xf32>
    %2 = vector.shape_cast %1 : vector<1x32x256xf32> to vector<32x256xf32>
    %cst = arith.constant dense<0.000000e+00> : vector<12x256xf32>
    %3 = tpu.matmul %0, %2, %cst {dimension_numbers = #tpu.dot_dimension_numbers<[1], [0], [0], [1], [0, 0, 1, 1], [], []>} : vector<12x32xf32>, vector<32x256xf32>, vector<12x256xf32> -> vector<12x256xf32>
    %c0_4 = arith.constant 0 : index
    %c0_5 = arith.constant 0 : index
    %4 = vector.load %arg4[%c0_4, %c0_5] : memref<12x1xf32, #tpu.memory_space<vmem>>, vector<12x1xf32>
    %5 = vector.broadcast %4 : vector<12x1xf32> to vector<12x256xf32>
    %6 = arith.addf %3, %5 : vector<12x256xf32>
    %c0_6 = arith.constant 0 : index
    %c0_7 = arith.constant 0 : index
    %c0_8 = arith.constant 0 : index
    %7 = vector.load %arg5[%c0_6, %c0_7, %c0_8] : memref<1x12x256xf32, #tpu.memory_space<vmem>>, vector<1x12x256xf32>
    %8 = vector.shape_cast %7 : vector<1x12x256xf32> to vector<12x256xf32>
    %9 = vector.shape_cast %6 : vector<12x256xf32> to vector<1x12x256xf32>
    tpu.vector_store %arg5[%c0_6, %c0_7, %c0_8], %9 {strides = array<i32>} : memref<1x12x256xf32, #tpu.memory_space<vmem>>, vector<1x12x256xf32>,
    return
  }
  func.func @transform_0(%arg0: i32, %arg1: i32) -> (i32, i32, i32) {
    %c0_i32 = arith.constant 0 : i32
    %c0_i32_0 = arith.constant 0 : i32
    return %arg0, %c0_i32, %arg1 : i32, i32, i32
  }
  func.func @transform_1(%arg0: i32, %arg1: i32) -> (i32, i32) {
    %c0_i32 = arith.constant 0 : i32
    %c0_i32_0 = arith.constant 0 : i32
    %c0_i32_1 = arith.constant 0 : i32
    return %c0_i32, %c0_i32_0 : i32, i32
  }
  func.func @transform_2(%arg0: i32, %arg1: i32) -> (i32, i32) {
    %c0_i32 = arith.constant 0 : i32
    %c0_i32_0 = arith.constant 0 : i32
    %c0_i32_1 = arith.constant 0 : i32
    return %c0_i32, %c0_i32_0 : i32, i32
  }
  func.func @transform_3(%arg0: i32, %arg1: i32) -> (i32, i32, i32) {
    %c0_i32 = arith.constant 0 : i32
    %c0_i32_0 = arith.constant 0 : i32
    return %arg0, %c0_i32, %arg1 : i32, i32, i32
  }
}

</mosaic_0001>

<bundles_post_ra>
// kernel: bbox_head_forward.1
= control target key start
LH: loop header
LB: loop body
LE: loop exit
PB: predicated region body
PF: predicated region fallthrough
CT: control target
= control target key end

     0   :  { %s503_s12 = smov 0   ;;  %s505_s13 = smov 0   ;;  %s552_s0 = inlined_call_operand.vmem [shape: f32[2,32,256], index: 0, kind: input, shape index: {}]   ;;  %s553_s1 = inlined_call_operand.vmem [shape: f32[12,32], index: 1, kind: input, shape index: {}]   ;;  %s554_s2 = inlined_call_operand.vmem [shape: f32[12,1], index: 2, kind: input, shape index: {}]   ;;  %s555_s3 = inlined_call_operand.vmem [shape: f32[2,12,256], index: 3, kind: output, shape index: {}]  }
   0x1   :  { %s507_s14 = smov 0  }
   0x2 LB: > { %s25_s15 = sadd.s32 1, %s475_s13  ;;  %p411_p0 = scmp.ge.s32.totalorder %s479_s14, 1  ;;  %s479_s14 = sphi %s507_s14, %s13_s14   ;;  %s475_s13 = sphi %s505_s13, %s557_s13   ;;  %s471_s12 = sphi %s503_s12, %s556_s12  }
   0x3   : > { %p27_p1 = scmp.ge.s32.totalorder %s25_s15, 2  ;;  %p158_p2 = scmp.lt.s32.totalorder %s479_s14, 3 }
   0x5   : > { %s559_s15 = smov (%p27_p1, %s25_s15), 0  ;;  %p159_p3 = pnand %p411_p0, %p158_p2 }
   0x6   : > { %p191_p4 = scmp.lt.s32.totalorder (!%p159_p3), %s471_s12, 1 }
   0x7   : > { %162 = sbr.rel (%p159_p3) target bundleno = 222 (0xde), region = 32 }
   0xc   : > { %v481_v0 = vmov 0.0   ;;  %v220_v1 = vld [vmem:[%s554_s2] sm:$0xff]  ;;  %s561_s12 = smov (!%p191_p4, %s471_s12), 1  ;;  %v482_v2 = vmov 0   ;;  %vm232_vm0 = vcmask 261120  }
   0xd   : > { %303 = vmatprep.mubr.f32.mxu0 %v481_v0  ;;  %309 = vmatprep.mubr.f32.mxu1 %v481_v0  ;;  %s420_s18 = sshll.u32 %s561_s12, 6  ;;  %v210_v11 = vld [vmem:[%s553_s1] sm:$0xff]  ;;  %v211_v12 = vld [vmem:[%s553_s1 + $0x8] sm:$0xf]  ;;  %s421_s28 = sshll.u32 %s561_s12, 5 }
   0xe   : > { %456 = vset.pattern.permute.xlu0 %v482_v2  ;;  %s198_s21 = scalar_lea.vmem %s552_s0, %s420_s18  ;;  %v221_v13 = vld [vmem:[%s554_s2 + $0x8] sm:$0xf]  ;;  %s208_s4 = scalar_lea.vmem %s555_s3, %s421_s28 }
   0xf   : > { %224 = vperm.xlu0 %456, %v220_v1   ;;  %v219_v3 = vld [vmem:[%s198_s21 + $0x38] sm:$0xff]  ;;  %v218_v4 = vld [vmem:[%s198_s21 + $0x30] sm:$0xff]  ;;  %v217_v5 = vld [vmem:[%s198_s21 + $0x28] sm:$0xff] }
  0x10   : > { %263 = vmatprep.subr.mxu0 %v219_v3  ;;  %422 = vmatprep.subr.mxu1 %v219_v3  ;;  %v216_v6 = vld [vmem:[%s198_s21 + $0x20] sm:$0xff]  ;;  %v215_v7 = vld [vmem:[%s198_s21 + $0x18] sm:$0xff]  ;;  %v214_v8 = vld [vmem:[%s198_s21 + $0x10] sm:$0xff] }
  0x11   : > { %264 = vmatpush1.msra.mxu0 %v218_v4  ;;  %426 = vmatpush1.msra.mxu1 %v218_v4  ;;  %v213_v9 = vld [vmem:[%s198_s21 + $0x8] sm:$0xff]  ;;  %v212_v10 = vld [vmem:[%s198_s21] sm:$0xff] }
  0x12   : > { %265 = vmatprep.subr.mxu0 %v217_v5  ;;  %423 = vmatprep.subr.mxu1 %v217_v5 }
  0x13   : > { %266 = vmatpush1.msra.mxu0 %v216_v6  ;;  %427 = vmatpush1.msra.mxu1 %v216_v6 }
  0x14   : > { %267 = vmatprep.subr.mxu0 %v215_v7  ;;  %424 = vmatprep.subr.mxu1 %v215_v7 }
  0x15   : > { %268 = vmatpush1.msra.mxu0 %v214_v8  ;;  %428 = vmatpush1.msra.mxu1 %v214_v8 }
  0x16   : > { %269 = vmatprep.subr.mxu0 %v213_v9  ;;  %425 = vmatprep.subr.mxu1 %v213_v9 }
  0x17   : > { %270 = vmatpush1.msra.mxu0 %v212_v10  ;;  %429 = vmatpush1.msra.mxu1 %v212_v10 }
  0x18   : > { %416 = vmatmul.mubr.msk.f32.vlgmr.msra.gmra.mxu0 %vm232_vm0, %v210_v11  ;;  %417 = vmatmul.mubr.msk.f32.vlgmr.msra.gmra.mxu1 %vm232_vm0, %v211_v12 }
  0x19   : > { %229 = vperm.xlu0 %456, %v221_v13  }
  0x8a   : > { %v225_v14 = vpop.permute.xlu0 %224 }
  0x94   : > { %v230_v15 = vpop.permute.xlu0 %229 }
  0xd8   : > { %v305_v16 = vpop.f32.mrf.mxu0  ;;  %v311_v17 = vpop.f32.mrf.mxu1 }
  0xd9   : > { %v306_v18 = vadd.f32 %v305_v16, %v225_v14  ;;  %v312_v19 = vadd.f32 %v311_v17, %v230_v15 }
  0xda   : > { %v307_v20 = vpop.f32.mrf.mxu0  ;;  %v313_v21 = vpop.f32.mrf.mxu1 }
  0xdb   : > { %316 = vst [vmem:[%s208_s4] sm:$0xff] %v306_v18  ;;  %318 = vst [vmem:[%s208_s4 + $0x10] sm:$0xf] %v312_v19  ;;  %v308_v22 = vadd.f32 %v307_v20, %v225_v14  ;;  %v314_v23 = vadd.f32 %v313_v21, %v230_v15 }
  0xdd   : > { %317 = vst [vmem:[%s208_s4 + $0x8] sm:$0xff] %v308_v22  ;;  %319 = vst [vmem:[%s208_s4 + $0x18] sm:$0xf] %v314_v23 }
  0xde PF: > { %s13_s14 = sadd.s32 1, %s479_s14   ;;  %s556_s12 = smov %s475_s13 }
  0xdf   : > { %p10_p5 = scmp.ge.s32.totalorder %s13_s14, 4   ;;  %s557_s13 = smov %s559_s15 }
  0xe1   :  { %12 = sbr.rel (!%p10_p5) target bundleno = 2 (0x2), region = 62 }

</bundles_post_ra>
